<compile_context>
chip_gen: v6e
topology: v6e:2x2x1
jax: 0.10.0
libtpu: 0.0.40
codegen_flags: <defaults>
</compile_context>

<pallas_src>
import jax
import jax.numpy as jnp
from jax.experimental import pallas as pl
from jax.experimental.pallas import tpu as pltpu

LANES = 128
ROW_TILE = 8                  # sublane tile
MAX_BLOCK_ROWS_F32 = 2048     # (2048,128) f32 = 1 MiB per stream per block
MIN_BLOCK_ROWS_F32 = 512      # don't shrink blocks below ~256 KiB f32/stream
TARGET_BLOCKS = 4             # aim for >=4 grid steps (v7x has 2 TCs)
VMEM_LIMIT_BYTES = 32 * 1024 * 1024


def _round_up(x, m):
    return ((x + m - 1) // m) * m


def _block_rows(rows, itemsize):
    """Block rows: ~1 MiB/stream in native dtype, >=TARGET_BLOCKS blocks when
    possible (megacore), never silly-small blocks, always a multiple of 8."""
    scale = max(1, 4 // max(1, int(itemsize)))   # bf16 -> 2x rows, int8 -> 4x
    max_rows = MAX_BLOCK_ROWS_F32 * scale
    min_rows = MIN_BLOCK_ROWS_F32 * scale
    target = _round_up(pl.cdiv(rows, TARGET_BLOCKS), ROW_TILE)
    block = max(min_rows, min(max_rows, target))
    return min(block, _round_up(rows, ROW_TILE))


def _smooth_l1_f32(pred, target, beta):
    """Plain-JAX smooth-L1 in f32 (used for the <=127-element tails)."""
    pred = pred.astype(jnp.float32)
    target = target.astype(jnp.float32)
    diff = jnp.abs(pred - target)
    return jnp.where(diff < beta, 0.5 * diff * diff / beta, diff - 0.5 * beta)


# ---------------------------------------------------------------------------
# Kernels
# ---------------------------------------------------------------------------
def _make_reduce_kernel(beta, block_rows, rows_valid, has_weight):
    """Per-block partial-sum kernel (for 'sum'/'mean' reductions)."""
    beta = float(beta)
    half_over_beta = 0.5 / beta
    half_beta = 0.5 * beta
    # Compile-time: does the last block contain garbage rows at all?
    needs_mask = (rows_valid % block_rows) != 0

    def kernel(*refs):
        if has_weight:
            pred_ref, target_ref, weight_ref, partial_ref = refs
        else:
            pred_ref, target_ref, partial_ref = refs
            weight_ref = None

        pred = pred_ref[...].astype(jnp.float32)
        target = target_ref[...].astype(jnp.float32)
        diff = jnp.abs(pred - target)
        loss = jnp.where(diff < beta, diff * diff * half_over_beta,
                         diff - half_beta)
        if weight_ref is not None:
            loss = loss * weight_ref[...].astype(jnp.float32)

        if not needs_mask:
            # All blocks full: pure-VPU fold into one (8,128) vreg.
            partial_ref[...] = loss.reshape(-1, ROW_TILE, LANES).sum(axis=0)
        else:
            i = pl.program_id(0)
            last = pl.num_programs(0) - 1

            @pl.when(i != last)
            def _():
                # Interior blocks: zero masking cost.
                partial_ref[...] = loss.reshape(-1, ROW_TILE, LANES).sum(axis=0)

            @pl.when(i == last)
            def _():
                # Row-only mask (single axis-0 iota) on the edge block's
                # garbage rows; every in-bounds row is fully valid.
                row = jax.lax.broadcasted_iota(jnp.int32, loss.shape, 0)
                masked = jnp.where(i * block_rows + row < rows_valid,
                                   loss, 0.0)
                partial_ref[...] = masked.reshape(-1, ROW_TILE,
                                                  LANES).sum(axis=0)

    return kernel


def _make_elem_kernel(beta, weight_mode, loss_weight):
    """Elementwise loss kernel (reduction='none').

    weight_mode: 'none' | 'full' (3rd VMEM stream) | 'scalar' (SMEM scalar).
    loss_weight is a compile-time constant folded into the kernel.
    """
    beta = float(beta)
    half_over_beta = 0.5 / beta
    half_beta = 0.5 * beta
    loss_weight = float(loss_weight)

    def kernel(*refs):
        if weight_mode == 'full':
            pred_ref, target_ref, weight_ref, loss_ref = refs
        elif weight_mode == 'scalar':
            wsc_ref, pred_ref, target_ref, loss_ref = refs
        else:
            pred_ref, target_ref, loss_ref = refs

        pred = pred_ref[...].astype(jnp.float32)
        target = target_ref[...].astype(jnp.float32)
        diff = jnp.abs(pred - target)
        loss = jnp.where(diff < beta, diff * diff * half_over_beta,
                         diff - half_beta)
        if weight_mode == 'full':
            loss = loss * weight_ref[...].astype(jnp.float32)
        elif weight_mode == 'scalar':
            loss = loss * wsc_ref[0]
        if loss_weight != 1.0:
            loss = loss * loss_weight
        loss_ref[...] = loss.astype(loss_ref.dtype)

    return kernel


# ---------------------------------------------------------------------------
# pallas_call wrappers
# ---------------------------------------------------------------------------
def _compiler_params():
    return pltpu.CompilerParams(dimension_semantics=("parallel",),
                                vmem_limit_bytes=VMEM_LIMIT_BYTES)


def _run_reduce(pred2d, target2d, weight2d, beta):
    rows, lanes = pred2d.shape
    assert lanes == LANES
    block_rows = _block_rows(rows, pred2d.dtype.itemsize)
    num_blocks = pl.cdiv(rows, block_rows)

    tile = pl.BlockSpec((block_rows, LANES), lambda i: (i, 0))
    inputs = [pred2d, target2d]
    if weight2d is not None:
        inputs.append(weight2d)

    kernel = _make_reduce_kernel(beta, block_rows, rows, weight2d is not None)
    partials = pl.pallas_call(
        kernel,
        out_shape=jax.ShapeDtypeStruct((num_blocks * ROW_TILE, LANES),
                                       jnp.float32),
        grid=(num_blocks,),
        in_specs=[tile] * len(inputs),
        out_specs=pl.BlockSpec((ROW_TILE, LANES), lambda i: (i, 0)),
        compiler_params=_compiler_params(),
    )(*inputs)
    # Tiny final reduction (num_blocks * 8 * 128 f32) in plain JAX.
    return jnp.sum(partials, dtype=jnp.float32)


def _run_elem(pred2d, target2d, weight2d, w_scalar, beta, loss_weight,
              out_dtype):
    rows, lanes = pred2d.shape
    assert lanes == LANES
    block_rows = _block_rows(rows, pred2d.dtype.itemsize)
    num_blocks = pl.cdiv(rows, block_rows)

    tile = pl.BlockSpec((block_rows, LANES), lambda i: (i, 0))
    if weight2d is not None:
        weight_mode = 'full'
        inputs = [pred2d, target2d, weight2d]
        in_specs = [tile, tile, tile]
    elif w_scalar is not None:
        weight_mode = 'scalar'
        inputs = [jnp.asarray(w_scalar, jnp.float32).reshape(1),
                  pred2d, target2d]
        in_specs = [pl.BlockSpec(memory_space=pltpu.MemorySpace.SMEM),
                    tile, tile]
    else:
        weight_mode = 'none'
        inputs = [pred2d, target2d]
        in_specs = [tile, tile]

    kernel = _make_elem_kernel(beta, weight_mode, loss_weight)
    return pl.pallas_call(
        kernel,
        out_shape=jax.ShapeDtypeStruct((rows, LANES), out_dtype),
        grid=(num_blocks,),
        in_specs=in_specs,
        out_specs=tile,
        compiler_params=_compiler_params(),
    )(*inputs)


# ---------------------------------------------------------------------------
# Module
# ---------------------------------------------------------------------------
class SmoothL1Loss:
    """JAX/Pallas port of mmdet SmoothL1Loss (forward only)."""

    def __init__(self, beta=1.0, reduction='mean', loss_weight=1.0):
        assert beta > 0
        self.beta = float(beta)
        self.reduction = reduction
        self.loss_weight = float(loss_weight)

    def __call__(self, pred, target, weight=None, avg_factor=None,
                 reduction_override=None):
        assert reduction_override in (None, 'none', 'mean', 'sum')
        reduction = reduction_override if reduction_override else self.reduction
        assert pred.shape == target.shape and pred.size > 0

        orig_shape = pred.shape
        numel = pred.size
        out_dtype = pred.dtype
        beta = self.beta
        loss_weight = self.loss_weight

        # --- classify weight (avoid materializing broadcasts where possible)
        weight_mode = 'none'
        w_scalar = None
        w_full_flat = None
        if weight is not None:
            weight = jnp.asarray(weight)
            if weight.size == 1:
                weight_mode = 'scalar'
                w_scalar = weight.reshape(()).astype(jnp.float32)
            else:
                weight_mode = 'full'
                if weight.shape != orig_shape:
                    # Rare fallback (non-scalar broadcastable weight).
                    weight = jnp.broadcast_to(weight, orig_shape)
                w_full_flat = weight.reshape(-1)

        pred_f = pred.reshape(-1)
        target_f = target.reshape(-1)

        rows = numel // LANES
        tail = numel - rows * LANES

        def to_2d(flat):
            # Zero-copy reshape in the common 128-aligned case; otherwise a
            # prefix slice (no zero-fill pad passes).
            if tail:
                return flat[:rows * LANES].reshape(rows, LANES)
            return flat.reshape(rows, LANES)

        if reduction == 'none':
            # mmdet: avg_factor is ignored for reduction='none'.
            parts = []
            if rows > 0:
                main_w = to_2d(w_full_flat) if weight_mode == 'full' else None
                main_sc = w_scalar if weight_mode == 'scalar' else None
                loss2d = _run_elem(to_2d(pred_f), to_2d(target_f), main_w,
                                   main_sc, beta, loss_weight, out_dtype)
                parts.append(loss2d.reshape(-1))
            if tail > 0:
                tail_loss = _smooth_l1_f32(pred_f[rows * LANES:],
                                           target_f[rows * LANES:], beta)
                if weight_mode == 'full':
                    tail_loss = tail_loss * (
                        w_full_flat[rows * LANES:].astype(jnp.float32))
                elif weight_mode == 'scalar':
                    tail_loss = tail_loss * w_scalar
                if loss_weight != 1.0:
                    tail_loss = tail_loss * loss_weight
                parts.append(tail_loss.astype(out_dtype))
            out_flat = parts[0] if len(parts) == 1 else jnp.concatenate(parts)
            return out_flat.reshape(orig_shape)

        # --- 'sum' / 'mean'
        if reduction == 'sum' and avg_factor is not None:
            raise ValueError('avg_factor can not be used with reduction="sum"')

        total = jnp.float32(0.0)
        if rows > 0:
            main_w = to_2d(w_full_flat) if weight_mode == 'full' else None
            total = total + _run_reduce(to_2d(pred_f), to_2d(target_f),
                                        main_w, beta)
        if tail > 0:
            tail_loss = _smooth_l1_f32(pred_f[rows * LANES:],
                                       target_f[rows * LANES:], beta)
            if weight_mode == 'full':
                tail_loss = tail_loss * (
                    w_full_flat[rows * LANES:].astype(jnp.float32))
            total = total + jnp.sum(tail_loss, dtype=jnp.float32)
        if weight_mode == 'scalar':
            # sum(loss * w) == w * sum(loss) for scalar w — free.
            total = total * w_scalar

        if reduction == 'mean':
            denom = numel if avg_factor is None else avg_factor
            total = total / jnp.asarray(denom, jnp.float32)
        return loss_weight * total


# ---------------------------------------------------------------------------
# Reference + tests
# ---------------------------------------------------------------------------
def _reference(pred, target, weight, beta, reduction, loss_weight,
               avg_factor=None):
    pred = pred.astype(jnp.float32)
    target = target.astype(jnp.float32)
    diff = jnp.abs(pred - target)
    loss = jnp.where(diff < beta, 0.5 * diff * diff / beta, diff - 0.5 * beta)
    if weight is not None:
        loss = loss * jnp.asarray(weight).astype(jnp.float32)
    if reduction == 'none':
        return loss_weight * loss
    if reduction == 'sum':
        return loss_weight * jnp.sum(loss)
    if avg_factor is None:
        return loss_weight * jnp.sum(loss) / pred.size
    return loss_weight * jnp.sum(loss) / avg_factor


if __name__ == "__main__":
    key = jax.random.PRNGKey(0)
    k1, k2, k3, k4, k5, k6, k7 = jax.random.split(key, 7)

    # NCHW-ish bbox-regression tensor (numel = 2048, 128-aligned fast path).
    pred = jax.random.normal(k1, (2, 4, 16, 16), jnp.float32)
    target = jax.random.normal(k2, (2, 4, 16, 16), jnp.float32)
    weight = (jax.random.uniform(k3, (2, 4, 16, 16)) > 0.3).astype(jnp.float32)

    module = SmoothL1Loss(beta=1.0, reduction='mean', loss_weight=1.0)

    # mean, no weight (2-stream fast path, reduce kernel)
    out_mean = module(pred, target)
    jax.block_until_ready(out_mean)
    ref_mean = _reference(pred, target, None, 1.0, 'mean', 1.0)
    assert jnp.allclose(out_mean, ref_mean, rtol=1e-5, atol=1e-5)

    # sum with same-shape weight (3-stream reduce kernel)
    out_sum = module(pred, target, weight=weight, reduction_override='sum')
    jax.block_until_ready(out_sum)
    ref_sum = _reference(pred, target, weight, 1.0, 'sum', 1.0)
    assert jnp.allclose(out_sum, ref_sum, rtol=1e-5, atol=1e-4)

    # none reduction with same-shape weight (elementwise kernel)
    out_none = module(pred, target, weight=weight, reduction_override='none')
    jax.block_until_ready(out_none)
    ref_none = _reference(pred, target, weight, 1.0, 'none', 1.0)
    assert out_none.shape == pred.shape
    assert jnp.allclose(out_none, ref_none, rtol=1e-5, atol=1e-5)

    # mean with avg_factor
    out_avg = module(pred, target, weight=weight, avg_factor=123.0)
    jax.block_until_ready(out_avg)
    ref_avg = _reference(pred, target, weight, 1.0, 'mean', 1.0,
                         avg_factor=123.0)
    assert jnp.allclose(out_avg, ref_avg, rtol=1e-5, atol=1e-5)

    # scalar weight: 'none' uses the SMEM in-kernel scalar; 'mean' folds it
    # into the final sum (no broadcast materialization either way).
    w_sc = jnp.asarray(0.7, jnp.float32)
    out_sc_none = module(pred, target, weight=w_sc, reduction_override='none')
    jax.block_until_ready(out_sc_none)
    ref_sc_none = _reference(pred, target, w_sc, 1.0, 'none', 1.0)
    assert jnp.allclose(out_sc_none, ref_sc_none, rtol=1e-5, atol=1e-5)
    out_sc_mean = module(pred, target, weight=w_sc)
    jax.block_until_ready(out_sc_mean)
    ref_sc_mean = _reference(pred, target, w_sc, 1.0, 'mean', 1.0)
    assert jnp.allclose(out_sc_mean, ref_sc_mean, rtol=1e-5, atol=1e-5)

    # Ragged shape (numel not a multiple of 128): exercises the aligned-prefix
    # kernel with the row-only edge mask + the plain-JAX tail.
    pred_r = jax.random.normal(k4, (7, 33), jnp.float32)
    target_r = jax.random.normal(k5, (7, 33), jnp.float32)
    out_r_mean = module(pred_r, target_r)
    jax.block_until_ready(out_r_mean)
    ref_r_mean = _reference(pred_r, target_r, None, 1.0, 'mean', 1.0)
    assert jnp.allclose(out_r_mean, ref_r_mean, rtol=1e-5, atol=1e-5)
    out_r_none = module(pred_r, target_r, reduction_override='none')
    jax.block_until_ready(out_r_none)
    ref_r_none = _reference(pred_r, target_r, None, 1.0, 'none', 1.0)
    assert jnp.allclose(out_r_none, ref_r_none, rtol=1e-5, atol=1e-5)

    # Tiny tensor (< 128 elements): pure-JAX path, no kernel launch.
    pred_t = jax.random.normal(k6, (3, 5), jnp.float32)
    target_t = jax.random.normal(k7, (3, 5), jnp.float32)
    out_t = module(pred_t, target_t)
    jax.block_until_ready(out_t)
    ref_t = _reference(pred_t, target_t, None, 1.0, 'mean', 1.0)
    assert jnp.allclose(out_t, ref_t, rtol=1e-5, atol=1e-5)

    # bf16 inputs go straight into the kernel (cast to f32 inside VMEM;
    # dtype-scaled block rows).
    pred_b = pred.astype(jnp.bfloat16)
    target_b = target.astype(jnp.bfloat16)
    out_b = module(pred_b, target_b, reduction_override='sum')
    jax.block_until_ready(out_b)
    ref_b = _reference(pred_b, target_b, None, 1.0, 'sum', 1.0)
    assert jnp.allclose(out_b, ref_b, rtol=2e-2, atol=2e-2)

    # Non-default beta / loss_weight (loss_weight folded into the elementwise
    # kernel as a compile-time constant).
    mod2 = SmoothL1Loss(beta=0.5, reduction='sum', loss_weight=2.0)
    out2 = mod2(pred, target, weight=weight)
    jax.block_until_ready(out2)
    ref2 = _reference(pred, target, weight, 0.5, 'sum', 2.0)
    assert jnp.allclose(out2, ref2, rtol=1e-5, atol=1e-4)
    out2n = mod2(pred, target, reduction_override='none')
    jax.block_until_ready(out2n)
    ref2n = _reference(pred, target, None, 0.5, 'none', 2.0)
    assert jnp.allclose(out2n, ref2n, rtol=1e-5, atol=1e-5)

    print("KERNEL_OK")
</pallas_src>

<mosaic_0001>
module attributes {stable_mosaic.version = 11 : i64} {
  func.func @kernel(%arg0: i32, %arg1: memref<16x128xf32, #tpu.memory_space<vmem>>, %arg2: memref<16x128xf32, #tpu.memory_space<vmem>>, %arg3: memref<8x128xf32, #tpu.memory_space<vmem>>) attributes {dimension_semantics = [#tpu.dimension_semantics<parallel>], iteration_bounds = array<i64: 1>, scalar_prefetch = 0 : i64, scratch_operands = 0 : i64, tpu.core_type = #tpu.core_type<tc>, window_params = [{transform_indices = @transform_0, window_bounds = array<i64: 16, 128>}, {transform_indices = @transform_1, window_bounds = array<i64: 16, 128>}, {transform_indices = @transform_2, window_bounds = array<i64: 8, 128>}]} {
    %c0 = arith.constant 0 : index
    %c0_0 = arith.constant 0 : index
    %0 = vector.load %arg1[%c0, %c0_0] : memref<16x128xf32, #tpu.memory_space<vmem>>, vector<16x128xf32>
    %c0_1 = arith.constant 0 : index
    %c0_2 = arith.constant 0 : index
    %1 = vector.load %arg2[%c0_1, %c0_2] : memref<16x128xf32, #tpu.memory_space<vmem>>, vector<16x128xf32>
    %2 = arith.subf %0, %1 : vector<16x128xf32>
    %3 = math.absf %2 : vector<16x128xf32>
    %cst = arith.constant 1.000000e+00 : f32
    %4 = vector.broadcast %cst : f32 to vector<16x128xf32>
    %5 = arith.cmpf olt, %3, %4 : vector<16x128xf32>
    %6 = arith.mulf %3, %3 : vector<16x128xf32>
    %cst_3 = arith.constant 5.000000e-01 : f32
    %7 = vector.broadcast %cst_3 : f32 to vector<16x128xf32>
    %8 = arith.mulf %6, %7 : vector<16x128xf32>
    %cst_4 = arith.constant 5.000000e-01 : f32
    %9 = vector.broadcast %cst_4 : f32 to vector<16x128xf32>
    %10 = arith.subf %3, %9 : vector<16x128xf32>
    %11 = arith.select %5, %8, %10 : vector<16x128xi1>, vector<16x128xf32>
    %12 = vector.shape_cast %11 : vector<16x128xf32> to vector<2x8x128xf32>
    %cst_5 = arith.constant dense<0.000000e+00> : vector<8x128xf32>
    %13 = vector.multi_reduction <add>, %12, %cst_5 [0] : vector<2x8x128xf32> to vector<8x128xf32>
    %c0_6 = arith.constant 0 : index
    %c0_7 = arith.constant 0 : index
    %14 = vector.load %arg3[%c0_6, %c0_7] : memref<8x128xf32, #tpu.memory_space<vmem>>, vector<8x128xf32>
    tpu.vector_store %arg3[%c0_6, %c0_7], %13 {strides = array<i32>} : memref<8x128xf32, #tpu.memory_space<vmem>>, vector<8x128xf32>,
    return
  }
  func.func @transform_0(%arg0: i32) -> (i32, i32) {
    %c0_i32 = arith.constant 0 : i32
    %c0_i32_0 = arith.constant 0 : i32
    return %arg0, %c0_i32 : i32, i32
  }
  func.func @transform_1(%arg0: i32) -> (i32, i32) {
    %c0_i32 = arith.constant 0 : i32
    %c0_i32_0 = arith.constant 0 : i32
    return %arg0, %c0_i32 : i32, i32
  }
  func.func @transform_2(%arg0: i32) -> (i32, i32) {
    %c0_i32 = arith.constant 0 : i32
    %c0_i32_0 = arith.constant 0 : i32
    return %arg0, %c0_i32 : i32, i32
  }
}

</mosaic_0001>

<bundles_post_ra>
// kernel: tpu_custom_call.1
= control target key start
LH: loop header
LB: loop body
LE: loop exit
PB: predicated region body
PF: predicated region fallthrough
CT: control target
= control target key end

     0   :  { %7 = vsyncpa [#allocation3], 0  ;;  %s178_s0 = inlined_call_operand.hbm [shape: f32[16,128], index: 0, kind: input, shape index: {}]   ;;  %s179_s1 = inlined_call_operand.hbm [shape: f32[16,128], index: 1, kind: input, shape index: {}]   ;;  %s180_s2 = inlined_call_operand.hbm [shape: f32[8,128], index: 2, kind: output, shape index: {}]  }
   0x1   :  { %8 = vsyncpa [#allocation6], 0 }
   0x2   :  { %9 = vsyncpa [#allocation4], 0  ;;  %s149_s9 = smov [#allocation2]  }
   0x3   :  { %s15_s10 = sshll.u32 %s149_s9, 4  ;;  %s16_s10 = int_to_ptr.vmem [resolvable:$true] %s15_s10 }
   0x4   :  { %s91_s11 = scalar_lea.vmem %s16_s10, 256  ;;  %p96_p1 = scmp.lt.s32.totalorder %s16_s10, %s16_s10 }
   0x5   :  { %p92_p0 = scmp.ne.s32.totalorder %s16_s10, %s91_s11  ;;  %p97_p2 = scmp.lt.s32.totalorder %s91_s11, %s91_s11 }
   0x7   :  { %p98_p3 = por %p97_p2, %p96_p1 }
   0x9   :  { %p99_p4 = pnand %p98_p3, %p92_p0 }
   0xb   :  { %102 = shalt.err (!%p99_p4)
}
   0xc   :  { %s150_s12 = smov 128   ;;  %s151_s13 = smov 8  }
   0xd   :  { %21 = dma.hbm_to_vmem [thread:$0]  %s178_s0, 256, %s16_s10, [#allocation3], %s150_s12, %s150_s12, %s151_s13  }
   0xe   :  { %s152_s16 = smov [#allocation5]  }
   0xf   :  { %s27_s17 = sshll.u32 %s152_s16, 4  ;;  %s28_s17 = int_to_ptr.vmem [resolvable:$true] %s27_s17 }
  0x10   :  { %s111_s18 = scalar_lea.vmem %s28_s17, 256  ;;  %p116_p6 = scmp.lt.s32.totalorder %s28_s17, %s28_s17 }
  0x11   :  { %p112_p5 = scmp.ne.s32.totalorder %s28_s17, %s111_s18  ;;  %p117_p7 = scmp.lt.s32.totalorder %s111_s18, %s111_s18 }
  0x13   :  { %p118_p8 = por %p117_p7, %p116_p6 }
  0x15   :  { %p119_p9 = pnand %p118_p8, %p112_p5 }
  0x17   :  { %122 = shalt.err (!%p119_p9)
}
  0x18   :  { %33 = dma.hbm_to_vmem [thread:$0]  %s179_s1, 256, %s28_s17, [#allocation6], %s150_s12, %s150_s12, %s151_s13  }
  0x19   :  { %143 = dma.done.wait [#allocation3], 256  }
  0x1a   :  { %144 = vsyncadd [#allocation3], 4294967040 }
  0x1b   :  { %145 = dma.done.wait [#allocation6], 256  }
  0x1c   :  { %146 = vsyncadd [#allocation6], 4294967040  ;;  %v40_v0 = vld [vmem:[#allocation2] sm:$0xff]  ;;  %v41_v1 = vld [vmem:[#allocation2 + $0x8] sm:$0xff]  ;;  %s153_s0 = smov [#allocation7]  }
  0x1d   :  { %v42_v2 = vld [vmem:[#allocation5] sm:$0xff]  ;;  %v43_v3 = vld [vmem:[#allocation5 + $0x8] sm:$0xff]  ;;  %s66_s1 = sshll.u32 %s153_s0, 4  ;;  %s67_s1 = int_to_ptr.vmem [resolvable:$true] %s66_s1 }
  0x1e   :  { %v44_v4 = vsub.f32 %v40_v0, %v42_v2  ;;  %v45_v5 = vsub.f32 %v41_v1, %v43_v3  ;;  %s123_s21 = scalar_lea.vmem %s67_s1, 128  ;;  %p128_p11 = scmp.lt.s32.totalorder %s67_s1, %s67_s1 }
  0x1f   :  { %p124_p10 = scmp.ne.s32.totalorder %s67_s1, %s123_s21  ;;  %p129_p12 = scmp.lt.s32.totalorder %s123_s21, %s123_s21 }
  0x20   :  { %v46_v6 = vand.u32 2147483647, %v44_v4  ;;  %v47_v7 = vand.u32 2147483647, %v45_v5 }
  0x21   :  { %p130_p13 = por %p129_p12, %p128_p11 }
  0x22   :  { %v50_v8 = vmul.f32 %v46_v6, %v46_v6  ;;  %v76_v9 = vadd.f32 -0.5, %v46_v6  ;;  %vm48_vm0 = vcmp.lt.f32.partialorder %v46_v6, 1.0  ;;  %v51_v10 = vmul.f32 %v47_v7, %v47_v7 }
  0x23   :  { %v77_v11 = vadd.f32 -0.5, %v47_v7  ;;  %vm49_vm1 = vcmp.lt.f32.partialorder %v47_v7, 1.0  ;;  %p131_p0 = pnand %p130_p13, %p124_p10 }
  0x24   :  { %v52_v12 = vmul.f32 0.5, %v50_v8  ;;  %v53_v13 = vmul.f32 0.5, %v51_v10 }
  0x26   :  { %v56_v14 = vsel %vm48_vm0, %v52_v12, %v76_v9  ;;  %v57_v15 = vsel %vm49_vm1, %v53_v13, %v77_v11 }
  0x27   :  { %v58_v16 = vadd.f32 %v57_v15, %v56_v14 }
  0x29   :  { %59 = vst [vmem:[#allocation7] sm:$0xff] %v58_v16 }
  0x2a   :  { %134 = shalt.err (!%p131_p0)
}
  0x2b   :  { %69 = dma.vmem_to_hbm [thread:$0]  %s67_s1, 128, %s180_s2, [#allocation4]  }
  0x2c   :  { %147 = dma.done.wait [#allocation4], 128  }
  0x2d   :  { %148 = vsyncadd [#allocation4], 4294967168 }
  0x2e   :  { %73 = vsyncpa [#allocation3], 1 }
  0x2f   :  { %74 = vsyncpa [#allocation6], 1 }
  0x30   :  { %75 = vsyncpa [#allocation4], 1 }

</bundles_post_ra>
